<compile_context>
chip_gen: v7x
topology: tpu7x:2x2x1
jax: 0.10.0
libtpu: 0.0.40
codegen_flags: <defaults>
</compile_context>

<pallas_src>
import functools

import jax
import jax.numpy as jnp
from jax import lax
from jax.experimental import pallas as pl
from jax.experimental.pallas import tpu as pltpu


def _orth_reg_kernel(r_ref, c_ref, out_ref, *, total_rows, block_rows,
                     num_regions, mask_tail):
    # r_ref / c_ref: (B, M, C) block for this grid step, native dtype in HBM;
    # upcast only after the load so HBM moves only the native-dtype bytes.
    r = r_ref[...].astype(jnp.float32)
    c = c_ref[...].astype(jnp.float32)
    M = num_regions
    C = r.shape[-1]

    if mask_tail:
        # The last block may overrun N; zero the invalid rows so they
        # contribute exactly 0 to both partial sums (what zero-padding did,
        # but without the extra HBM copy).
        rows = (pl.program_id(0) * block_rows
                + lax.broadcasted_iota(jnp.int32, (block_rows, M), 0))
        valid = (rows < total_rows)[..., None]            # (B, M, 1)
        r = jnp.where(valid, r, 0.0)
        c = jnp.where(valid, c, 0.0)

    # ---- center loss partial (MSE reduction='sum'): keep per-lane (C)
    # partials so no cross-lane reduce is needed here.
    diff = r - c
    center_lanes = jnp.sum(diff * diff, axis=(0, 1)).reshape(1, 1, C)

    # ---- orth loss partial.
    # F.normalize(p=2, dim=-1, eps=1e-12) == x * rsqrt(max(||x||^2, 1e-24)).
    rn = r * lax.rsqrt(jnp.maximum(jnp.sum(r * r, axis=-1, keepdims=True), 1e-24))
    cn = c * lax.rsqrt(jnp.maximum(jnp.sum(c * c, axis=-1, keepdims=True), 1e-24))

    # VPU/XLU formulation of the batched similarity (no batched dot_general
    # that would unroll into B tiny MXU matmuls per step): for each center
    # column j, sim_j[b, i] = <rn[b, i], cn[b, j]>; mask i == j exactly
    # (PyTorch eye-mask) and accumulate |.|.
    col_idx = lax.broadcasted_iota(jnp.int32, (rn.shape[0], M), 1)  # hoisted
    orth = jnp.float32(0.0)
    for j in range(M):                                    # M is small & static
        sim_j = jnp.sum(rn * cn[:, j:j + 1, :], axis=-1)  # (B, M)
        abs_j = jnp.where(col_idx != j, jnp.abs(sim_j), 0.0)
        orth = orth + jnp.sum(abs_j)

    # Fused per-step partial output: row 0 = per-lane center partials,
    # row 1 = orth scalar broadcast across lanes (host reads lane 0).
    row_sel = lax.broadcasted_iota(jnp.int32, (1, 2, C), 1)
    out_ref[...] = jnp.where(row_sel == 0, center_lanes, orth)


def _pick_block_and_vmem(n_rows, num_regions, channels, in_dtype):
    """Derive the per-step batch B from a per-generation VMEM budget."""
    itemsize = jnp.dtype(in_dtype).itemsize
    try:
        kind = jax.devices()[0].device_kind.lower()
    except Exception:  # no device info -> fall back to the conservative path
        kind = ""
    is_v7 = ("v7" in kind) or ("7x" in kind)
    if is_v7:
        budget, vmem_limit = 40 * 1024 * 1024, 48 * 1024 * 1024  # 64 MiB / TC
    else:
        budget, vmem_limit = 56 * 1024 * 1024, 64 * 1024 * 1024  # 128 MiB VMEM
    # Per batch-row VMEM: 2 inputs x 2 pipeline buffers in native dtype plus
    # ~6 f32-sized live temporaries (r, c, diff, rn, cn, per-j product).
    per_row = num_regions * channels * (2 * 2 * itemsize + 6 * 4)
    block = max(1, min(budget // per_row, 1024))
    if is_v7 and n_rows >= 2:
        # Keep >= 2 grid steps so the "parallel" axis feeds both TensorCores.
        block = min(block, -(-n_rows // 2))
    return int(min(block, n_rows)), vmem_limit


def orth_reg_regularization(rofs, centers, base_channels=128, block_rows=None):
    """Pallas equivalent of OrthRegRegularization.forward.

    rofs, centers: (N, M*C) float arrays (any float dtype; kept native in HBM).
    Returns (center_loss, orth_loss) as float32 scalars.
    """
    N, MC = rofs.shape
    C = base_channels
    M = MC // C
    assert M * C == MC, "feature dim must be a multiple of base_channels"

    B_auto, vmem_limit = _pick_block_and_vmem(N, M, C, rofs.dtype)
    B = int(min(block_rows, N)) if block_rows is not None else B_auto
    num_steps = (N + B - 1) // B
    mask_tail = (N % B) != 0            # no jnp.pad: mask the tail in-kernel

    r3 = rofs.reshape(N, M, C)          # free reshapes, no data movement
    c3 = centers.reshape(N, M, C)

    kernel = functools.partial(
        _orth_reg_kernel, total_rows=N, block_rows=B,
        num_regions=M, mask_tail=mask_tail)

    partials = pl.pallas_call(
        kernel,
        out_shape=jax.ShapeDtypeStruct((num_steps, 2, C), jnp.float32),
        grid_spec=pltpu.PrefetchScalarGridSpec(
            num_scalar_prefetch=0,
            grid=(num_steps,),
            in_specs=[
                pl.BlockSpec((B, M, C), lambda s: (s, 0, 0)),
                pl.BlockSpec((B, M, C), lambda s: (s, 0, 0)),
            ],
            out_specs=pl.BlockSpec((1, 2, C), lambda s: (s, 0, 0)),
        ),
        compiler_params=pltpu.CompilerParams(
            dimension_semantics=("parallel",),  # stateless steps -> megacore OK
            vmem_limit_bytes=vmem_limit,
        ),
    )(r3, c3)

    center_loss = jnp.sum(partials[:, 0, :]) / N
    mask_sum = float(M * M - M)          # (~eye(M)) has M^2 - M ones
    orth_loss = jnp.sum(partials[:, 1, 0]) / (mask_sum + 1e-6) / N
    return center_loss, orth_loss


def _reference(rofs, centers, base_channels):
    # Pure-JAX reference mirroring the PyTorch module.
    N, MC = rofs.shape
    C = base_channels
    M = MC // C
    rofs = rofs.astype(jnp.float32)
    centers = centers.astype(jnp.float32)
    center_loss = jnp.sum((rofs - centers) ** 2) / N

    r = rofs.reshape(N, M, C)
    c = centers.reshape(N, M, C)
    r = r / jnp.maximum(jnp.linalg.norm(r, axis=-1, keepdims=True), 1e-12)
    c = c / jnp.maximum(jnp.linalg.norm(c, axis=-1, keepdims=True), 1e-12)
    sim = jnp.einsum("nmc,nkc->nmk", r, c, precision=lax.Precision.HIGHEST)
    mask = 1.0 - jnp.eye(M)
    orth_loss = jnp.sum(jnp.abs(sim * mask[None])) / (mask.sum() + 1e-6) / N
    return center_loss, orth_loss


if __name__ == "__main__":
    key = jax.random.PRNGKey(0)
    k1, k2, k3, k4, k5, k6 = jax.random.split(key, 6)

    # Case 1: N=2, M=8, C=128 (flat feature dim 1024), f32, auto block size.
    N1, M1, C1 = 2, 8, 128
    rofs1 = jax.random.normal(k1, (N1, M1 * C1), dtype=jnp.float32)
    cent1 = jax.random.normal(k2, (N1, M1 * C1), dtype=jnp.float32)
    cl1, ol1 = orth_reg_regularization(rofs1, cent1, base_channels=C1)
    jax.block_until_ready((cl1, ol1))
    rcl1, rol1 = _reference(rofs1, cent1, C1)
    assert jnp.allclose(cl1, rcl1, rtol=1e-5, atol=1e-5)
    assert jnp.allclose(ol1, rol1, rtol=1e-5, atol=1e-5)

    # Case 2: N=5, M=4, C=128, f32, forced block_rows=2 -> 3 grid steps with an
    # in-kernel masked tail (exercises the no-pad path).
    N2, M2, C2 = 5, 4, 128
    rofs2 = jax.random.normal(k3, (N2, M2 * C2), dtype=jnp.float32)
    cent2 = jax.random.normal(k4, (N2, M2 * C2), dtype=jnp.float32)
    cl2, ol2 = orth_reg_regularization(rofs2, cent2, base_channels=C2,
                                       block_rows=2)
    jax.block_until_ready((cl2, ol2))
    rcl2, rol2 = _reference(rofs2, cent2, C2)
    assert jnp.allclose(cl2, rcl2, rtol=1e-5, atol=1e-5)
    assert jnp.allclose(ol2, rol2, rtol=1e-5, atol=1e-5)

    # Case 3: bf16 inputs stay native in HBM, f32 compute in-kernel.
    N3, M3, C3 = 3, 8, 128
    rofs3 = jax.random.normal(k5, (N3, M3 * C3), dtype=jnp.bfloat16)
    cent3 = jax.random.normal(k6, (N3, M3 * C3), dtype=jnp.bfloat16)
    cl3, ol3 = orth_reg_regularization(rofs3, cent3, base_channels=C3)
    jax.block_until_ready((cl3, ol3))
    rcl3, rol3 = _reference(rofs3, cent3, C3)
    assert jnp.allclose(cl3, rcl3, rtol=1e-4, atol=1e-4)
    assert jnp.allclose(ol3, rol3, rtol=1e-4, atol=1e-4)

    print("KERNEL_OK")
</pallas_src>

<mosaic_0001>
module attributes {stable_mosaic.version = 11 : i64} {
  func.func @_orth_reg_kernel(%arg0: i32, %arg1: memref<2x8x128xf32, #tpu.memory_space<vmem>>, %arg2: memref<2x8x128xf32, #tpu.memory_space<vmem>>, %arg3: memref<1x2x128xf32, #tpu.memory_space<vmem>>) attributes {dimension_semantics = [#tpu.dimension_semantics<parallel>], iteration_bounds = array<i64: 1>, scalar_prefetch = 0 : i64, scratch_operands = 0 : i64, tpu.core_type = #tpu.core_type<tc>, window_params = [{transform_indices = @transform_0, window_bounds = array<i64: 2, 8, 128>}, {transform_indices = @transform_1, window_bounds = array<i64: 2, 8, 128>}, {transform_indices = @transform_2, window_bounds = array<i64: 1, 2, 128>}]} {
    %c0 = arith.constant 0 : index
    %c0_0 = arith.constant 0 : index
    %c0_1 = arith.constant 0 : index
    %0 = vector.load %arg1[%c0, %c0_0, %c0_1] : memref<2x8x128xf32, #tpu.memory_space<vmem>>, vector<2x8x128xf32>
    %c0_2 = arith.constant 0 : index
    %c0_3 = arith.constant 0 : index
    %c0_4 = arith.constant 0 : index
    %1 = vector.load %arg2[%c0_2, %c0_3, %c0_4] : memref<2x8x128xf32, #tpu.memory_space<vmem>>, vector<2x8x128xf32>
    %2 = arith.subf %0, %1 : vector<2x8x128xf32>
    %3 = arith.mulf %2, %2 : vector<2x8x128xf32>
    %cst = arith.constant dense<0.000000e+00> : vector<128xf32>
    %4 = vector.multi_reduction <add>, %3, %cst [0, 1] : vector<2x8x128xf32> to vector<128xf32>
    %5 = vector.shape_cast %4 : vector<128xf32> to vector<1x1x128xf32>
    %6 = arith.mulf %0, %0 : vector<2x8x128xf32>
    %cst_5 = arith.constant dense<0.000000e+00> : vector<2x8xf32>
    %7 = vector.multi_reduction <add>, %6, %cst_5 [2] : vector<2x8x128xf32> to vector<2x8xf32>
    %8 = vector.shape_cast %7 : vector<2x8xf32> to vector<2x8x1xf32>
    %cst_6 = arith.constant 1.000000e-24 : f32
    %9 = vector.broadcast %cst_6 : f32 to vector<2x8x1xf32>
    %10 = arith.maximumf %8, %9 : vector<2x8x1xf32>
    %11 = math.rsqrt %10 : vector<2x8x1xf32>
    %12 = vector.broadcast %11 : vector<2x8x1xf32> to vector<2x8x128xf32>
    %13 = arith.mulf %0, %12 : vector<2x8x128xf32>
    %14 = arith.mulf %1, %1 : vector<2x8x128xf32>
    %cst_7 = arith.constant dense<0.000000e+00> : vector<2x8xf32>
    %15 = vector.multi_reduction <add>, %14, %cst_7 [2] : vector<2x8x128xf32> to vector<2x8xf32>
    %16 = vector.shape_cast %15 : vector<2x8xf32> to vector<2x8x1xf32>
    %cst_8 = arith.constant 1.000000e-24 : f32
    %17 = vector.broadcast %cst_8 : f32 to vector<2x8x1xf32>
    %18 = arith.maximumf %16, %17 : vector<2x8x1xf32>
    %19 = math.rsqrt %18 : vector<2x8x1xf32>
    %20 = vector.broadcast %19 : vector<2x8x1xf32> to vector<2x8x128xf32>
    %21 = arith.mulf %1, %20 : vector<2x8x128xf32>
    %22 = tpu.iota {dimensions = array<i32: 1>} : vector<2x8xi32>
    %23 = vector.extract_strided_slice %21 {offsets = [0, 0, 0], sizes = [2, 1, 128], strides = [1, 1, 1]} : vector<2x8x128xf32> to vector<2x1x128xf32>
    %24 = vector.broadcast %23 : vector<2x1x128xf32> to vector<2x8x128xf32>
    %25 = arith.mulf %13, %24 : vector<2x8x128xf32>
    %cst_9 = arith.constant dense<0.000000e+00> : vector<2x8xf32>
    %26 = vector.multi_reduction <add>, %25, %cst_9 [2] : vector<2x8x128xf32> to vector<2x8xf32>
    %c0_i32 = arith.constant 0 : i32
    %27 = vector.broadcast %c0_i32 : i32 to vector<2x8xi32>
    %28 = arith.cmpi ne, %22, %27 : vector<2x8xi32>
    %29 = math.absf %26 : vector<2x8xf32>
    %cst_10 = arith.constant 0.000000e+00 : f32
    %30 = vector.broadcast %cst_10 : f32 to vector<2x8xf32>
    %31 = arith.select %28, %29, %30 : vector<2x8xi1>, vector<2x8xf32>
    %32 = vector.shape_cast %31 : vector<2x8xf32> to vector<1x2x8xf32>
    %cst_11 = arith.constant dense<0.000000e+00> : vector<1xf32>
    %33 = vector.multi_reduction <add>, %32, %cst_11 [1, 2] : vector<1x2x8xf32> to vector<1xf32>
    %34 = vector.shape_cast %33 : vector<1xf32> to vector<1x1x1xf32>
    %35 = vector.extract %34[0, 0, 0] : f32 from vector<1x1x1xf32>
    %cst_12 = arith.constant 0.000000e+00 : f32
    %36 = arith.addf %cst_12, %35 : f32
    %37 = vector.extract_strided_slice %21 {offsets = [0, 1, 0], sizes = [2, 1, 128], strides = [1, 1, 1]} : vector<2x8x128xf32> to vector<2x1x128xf32>
    %38 = vector.broadcast %37 : vector<2x1x128xf32> to vector<2x8x128xf32>
    %39 = arith.mulf %13, %38 : vector<2x8x128xf32>
    %cst_13 = arith.constant dense<0.000000e+00> : vector<2x8xf32>
    %40 = vector.multi_reduction <add>, %39, %cst_13 [2] : vector<2x8x128xf32> to vector<2x8xf32>
    %c1_i32 = arith.constant 1 : i32
    %41 = vector.broadcast %c1_i32 : i32 to vector<2x8xi32>
    %42 = arith.cmpi ne, %22, %41 : vector<2x8xi32>
    %43 = math.absf %40 : vector<2x8xf32>
    %cst_14 = arith.constant 0.000000e+00 : f32
    %44 = vector.broadcast %cst_14 : f32 to vector<2x8xf32>
    %45 = arith.select %42, %43, %44 : vector<2x8xi1>, vector<2x8xf32>
    %46 = vector.shape_cast %45 : vector<2x8xf32> to vector<1x2x8xf32>
    %cst_15 = arith.constant dense<0.000000e+00> : vector<1xf32>
    %47 = vector.multi_reduction <add>, %46, %cst_15 [1, 2] : vector<1x2x8xf32> to vector<1xf32>
    %48 = vector.shape_cast %47 : vector<1xf32> to vector<1x1x1xf32>
    %49 = vector.extract %48[0, 0, 0] : f32 from vector<1x1x1xf32>
    %50 = arith.addf %36, %49 : f32
    %51 = vector.extract_strided_slice %21 {offsets = [0, 2, 0], sizes = [2, 1, 128], strides = [1, 1, 1]} : vector<2x8x128xf32> to vector<2x1x128xf32>
    %52 = vector.broadcast %51 : vector<2x1x128xf32> to vector<2x8x128xf32>
    %53 = arith.mulf %13, %52 : vector<2x8x128xf32>
    %cst_16 = arith.constant dense<0.000000e+00> : vector<2x8xf32>
    %54 = vector.multi_reduction <add>, %53, %cst_16 [2] : vector<2x8x128xf32> to vector<2x8xf32>
    %c2_i32 = arith.constant 2 : i32
    %55 = vector.broadcast %c2_i32 : i32 to vector<2x8xi32>
    %56 = arith.cmpi ne, %22, %55 : vector<2x8xi32>
    %57 = math.absf %54 : vector<2x8xf32>
    %cst_17 = arith.constant 0.000000e+00 : f32
    %58 = vector.broadcast %cst_17 : f32 to vector<2x8xf32>
    %59 = arith.select %56, %57, %58 : vector<2x8xi1>, vector<2x8xf32>
    %60 = vector.shape_cast %59 : vector<2x8xf32> to vector<1x2x8xf32>
    %cst_18 = arith.constant dense<0.000000e+00> : vector<1xf32>
    %61 = vector.multi_reduction <add>, %60, %cst_18 [1, 2] : vector<1x2x8xf32> to vector<1xf32>
    %62 = vector.shape_cast %61 : vector<1xf32> to vector<1x1x1xf32>
    %63 = vector.extract %62[0, 0, 0] : f32 from vector<1x1x1xf32>
    %64 = arith.addf %50, %63 : f32
    %65 = vector.extract_strided_slice %21 {offsets = [0, 3, 0], sizes = [2, 1, 128], strides = [1, 1, 1]} : vector<2x8x128xf32> to vector<2x1x128xf32>
    %66 = vector.broadcast %65 : vector<2x1x128xf32> to vector<2x8x128xf32>
    %67 = arith.mulf %13, %66 : vector<2x8x128xf32>
    %cst_19 = arith.constant dense<0.000000e+00> : vector<2x8xf32>
    %68 = vector.multi_reduction <add>, %67, %cst_19 [2] : vector<2x8x128xf32> to vector<2x8xf32>
    %c3_i32 = arith.constant 3 : i32
    %69 = vector.broadcast %c3_i32 : i32 to vector<2x8xi32>
    %70 = arith.cmpi ne, %22, %69 : vector<2x8xi32>
    %71 = math.absf %68 : vector<2x8xf32>
    %cst_20 = arith.constant 0.000000e+00 : f32
    %72 = vector.broadcast %cst_20 : f32 to vector<2x8xf32>
    %73 = arith.select %70, %71, %72 : vector<2x8xi1>, vector<2x8xf32>
    %74 = vector.shape_cast %73 : vector<2x8xf32> to vector<1x2x8xf32>
    %cst_21 = arith.constant dense<0.000000e+00> : vector<1xf32>
    %75 = vector.multi_reduction <add>, %74, %cst_21 [1, 2] : vector<1x2x8xf32> to vector<1xf32>
    %76 = vector.shape_cast %75 : vector<1xf32> to vector<1x1x1xf32>
    %77 = vector.extract %76[0, 0, 0] : f32 from vector<1x1x1xf32>
    %78 = arith.addf %64, %77 : f32
    %79 = vector.extract_strided_slice %21 {offsets = [0, 4, 0], sizes = [2, 1, 128], strides = [1, 1, 1]} : vector<2x8x128xf32> to vector<2x1x128xf32>
    %80 = vector.broadcast %79 : vector<2x1x128xf32> to vector<2x8x128xf32>
    %81 = arith.mulf %13, %80 : vector<2x8x128xf32>
    %cst_22 = arith.constant dense<0.000000e+00> : vector<2x8xf32>
    %82 = vector.multi_reduction <add>, %81, %cst_22 [2] : vector<2x8x128xf32> to vector<2x8xf32>
    %c4_i32 = arith.constant 4 : i32
    %83 = vector.broadcast %c4_i32 : i32 to vector<2x8xi32>
    %84 = arith.cmpi ne, %22, %83 : vector<2x8xi32>
    %85 = math.absf %82 : vector<2x8xf32>
    %cst_23 = arith.constant 0.000000e+00 : f32
    %86 = vector.broadcast %cst_23 : f32 to vector<2x8xf32>
    %87 = arith.select %84, %85, %86 : vector<2x8xi1>, vector<2x8xf32>
    %88 = vector.shape_cast %87 : vector<2x8xf32> to vector<1x2x8xf32>
    %cst_24 = arith.constant dense<0.000000e+00> : vector<1xf32>
    %89 = vector.multi_reduction <add>, %88, %cst_24 [1, 2] : vector<1x2x8xf32> to vector<1xf32>
    %90 = vector.shape_cast %89 : vector<1xf32> to vector<1x1x1xf32>
    %91 = vector.extract %90[0, 0, 0] : f32 from vector<1x1x1xf32>
    %92 = arith.addf %78, %91 : f32
    %93 = vector.extract_strided_slice %21 {offsets = [0, 5, 0], sizes = [2, 1, 128], strides = [1, 1, 1]} : vector<2x8x128xf32> to vector<2x1x128xf32>
    %94 = vector.broadcast %93 : vector<2x1x128xf32> to vector<2x8x128xf32>
    %95 = arith.mulf %13, %94 : vector<2x8x128xf32>
    %cst_25 = arith.constant dense<0.000000e+00> : vector<2x8xf32>
    %96 = vector.multi_reduction <add>, %95, %cst_25 [2] : vector<2x8x128xf32> to vector<2x8xf32>
    %c5_i32 = arith.constant 5 : i32
    %97 = vector.broadcast %c5_i32 : i32 to vector<2x8xi32>
    %98 = arith.cmpi ne, %22, %97 : vector<2x8xi32>
    %99 = math.absf %96 : vector<2x8xf32>
    %cst_26 = arith.constant 0.000000e+00 : f32
    %100 = vector.broadcast %cst_26 : f32 to vector<2x8xf32>
    %101 = arith.select %98, %99, %100 : vector<2x8xi1>, vector<2x8xf32>
    %102 = vector.shape_cast %101 : vector<2x8xf32> to vector<1x2x8xf32>
    %cst_27 = arith.constant dense<0.000000e+00> : vector<1xf32>
    %103 = vector.multi_reduction <add>, %102, %cst_27 [1, 2] : vector<1x2x8xf32> to vector<1xf32>
    %104 = vector.shape_cast %103 : vector<1xf32> to vector<1x1x1xf32>
    %105 = vector.extract %104[0, 0, 0] : f32 from vector<1x1x1xf32>
    %106 = arith.addf %92, %105 : f32
    %107 = vector.extract_strided_slice %21 {offsets = [0, 6, 0], sizes = [2, 1, 128], strides = [1, 1, 1]} : vector<2x8x128xf32> to vector<2x1x128xf32>
    %108 = vector.broadcast %107 : vector<2x1x128xf32> to vector<2x8x128xf32>
    %109 = arith.mulf %13, %108 : vector<2x8x128xf32>
    %cst_28 = arith.constant dense<0.000000e+00> : vector<2x8xf32>
    %110 = vector.multi_reduction <add>, %109, %cst_28 [2] : vector<2x8x128xf32> to vector<2x8xf32>
    %c6_i32 = arith.constant 6 : i32
    %111 = vector.broadcast %c6_i32 : i32 to vector<2x8xi32>
    %112 = arith.cmpi ne, %22, %111 : vector<2x8xi32>
    %113 = math.absf %110 : vector<2x8xf32>
    %cst_29 = arith.constant 0.000000e+00 : f32
    %114 = vector.broadcast %cst_29 : f32 to vector<2x8xf32>
    %115 = arith.select %112, %113, %114 : vector<2x8xi1>, vector<2x8xf32>
    %116 = vector.shape_cast %115 : vector<2x8xf32> to vector<1x2x8xf32>
    %cst_30 = arith.constant dense<0.000000e+00> : vector<1xf32>
    %117 = vector.multi_reduction <add>, %116, %cst_30 [1, 2] : vector<1x2x8xf32> to vector<1xf32>
    %118 = vector.shape_cast %117 : vector<1xf32> to vector<1x1x1xf32>
    %119 = vector.extract %118[0, 0, 0] : f32 from vector<1x1x1xf32>
    %120 = arith.addf %106, %119 : f32
    %121 = vector.extract_strided_slice %21 {offsets = [0, 7, 0], sizes = [2, 1, 128], strides = [1, 1, 1]} : vector<2x8x128xf32> to vector<2x1x128xf32>
    %122 = vector.broadcast %121 : vector<2x1x128xf32> to vector<2x8x128xf32>
    %123 = arith.mulf %13, %122 : vector<2x8x128xf32>
    %cst_31 = arith.constant dense<0.000000e+00> : vector<2x8xf32>
    %124 = vector.multi_reduction <add>, %123, %cst_31 [2] : vector<2x8x128xf32> to vector<2x8xf32>
    %c7_i32 = arith.constant 7 : i32
    %125 = vector.broadcast %c7_i32 : i32 to vector<2x8xi32>
    %126 = arith.cmpi ne, %22, %125 : vector<2x8xi32>
    %127 = math.absf %124 : vector<2x8xf32>
    %cst_32 = arith.constant 0.000000e+00 : f32
    %128 = vector.broadcast %cst_32 : f32 to vector<2x8xf32>
    %129 = arith.select %126, %127, %128 : vector<2x8xi1>, vector<2x8xf32>
    %130 = vector.shape_cast %129 : vector<2x8xf32> to vector<1x2x8xf32>
    %cst_33 = arith.constant dense<0.000000e+00> : vector<1xf32>
    %131 = vector.multi_reduction <add>, %130, %cst_33 [1, 2] : vector<1x2x8xf32> to vector<1xf32>
    %132 = vector.shape_cast %131 : vector<1xf32> to vector<1x1x1xf32>
    %133 = vector.extract %132[0, 0, 0] : f32 from vector<1x1x1xf32>
    %134 = arith.addf %120, %133 : f32
    %135 = tpu.iota {dimensions = array<i32: 1>} : vector<1x2x128xi32>
    %c0_i32_34 = arith.constant 0 : i32
    %136 = vector.broadcast %c0_i32_34 : i32 to vector<1x2x128xi32>
    %137 = arith.cmpi eq, %135, %136 : vector<1x2x128xi32>
    %138 = vector.shape_cast %5 : vector<1x1x128xf32> to vector<1x1x128xf32>
    %139 = vector.broadcast %138 : vector<1x1x128xf32> to vector<1x2x128xf32>
    %140 = vector.broadcast %134 : f32 to vector<1x2x128xf32>
    %141 = arith.select %137, %139, %140 : vector<1x2x128xi1>, vector<1x2x128xf32>
    %c0_35 = arith.constant 0 : index
    %c0_36 = arith.constant 0 : index
    %c0_37 = arith.constant 0 : index
    %142 = vector.load %arg3[%c0_35, %c0_36, %c0_37] : memref<1x2x128xf32, #tpu.memory_space<vmem>>, vector<1x2x128xf32>
    tpu.vector_store %arg3[%c0_35, %c0_36, %c0_37], %141 {strides = array<i32>} : memref<1x2x128xf32, #tpu.memory_space<vmem>>, vector<1x2x128xf32>,
    return
  }
  func.func @transform_0(%arg0: i32) -> (i32, i32, i32) {
    %c0_i32 = arith.constant 0 : i32
    %c0_i32_0 = arith.constant 0 : i32
    %c0_i32_1 = arith.constant 0 : i32
    return %arg0, %c0_i32, %c0_i32_0 : i32, i32, i32
  }
  func.func @transform_1(%arg0: i32) -> (i32, i32, i32) {
    %c0_i32 = arith.constant 0 : i32
    %c0_i32_0 = arith.constant 0 : i32
    %c0_i32_1 = arith.constant 0 : i32
    return %arg0, %c0_i32, %c0_i32_0 : i32, i32, i32
  }
  func.func @transform_2(%arg0: i32) -> (i32, i32, i32) {
    %c0_i32 = arith.constant 0 : i32
    %c0_i32_0 = arith.constant 0 : i32
    %c0_i32_1 = arith.constant 0 : i32
    return %arg0, %c0_i32, %c0_i32_0 : i32, i32, i32
  }
}

</mosaic_0001>

<bundles_post_ra>
// kernel: tpu_custom_call.1
= control target key start
LH: loop header
LB: loop body
LE: loop exit
PB: predicated region body
PF: predicated region fallthrough
CT: control target
= control target key end

     0   :  { %7 = vsyncpa [#allocation3], 0  ;;  %s673_s0 = inlined_call_operand.hbm [shape: f32[2,8,128], index: 0, kind: input, shape index: {}]   ;;  %s674_s1 = inlined_call_operand.hbm [shape: f32[2,8,128], index: 1, kind: input, shape index: {}]   ;;  %s675_s2 = inlined_call_operand.hbm [shape: f32[1,2,128], index: 2, kind: output, shape index: {}]  }
   0x1   :  { %8 = vsyncpa [#allocation6], 0 }
   0x2   :  { %9 = vsyncpa [#allocation4], 0  ;;  %s534_s9 = smov [#allocation2]   ;;  %s462_s13 = scalar_lea.hbm %s673_s0, 256 }
   0x3   :  { %s15_s10 = sshll.u32 %s534_s9, 4  ;;  %p463_p0 = scmp.ne.s32.totalorder %s673_s0, %s462_s13  ;;  %s16_s10 = int_to_ptr.vmem [resolvable:$true] %s15_s10 }
   0x4   :  { %p466_p1 = scmp.lt.u32.totalorder %s462_s13, %s673_s0 }
   0x6   :  { %p468_p2 = pnand %p466_p1, %p463_p0 }
   0x8   :  { %471 = shalt.err (!%p468_p2)
}
   0x9   :  { %s472_s18 = scalar_lea.vmem %s16_s10, 256  ;;  %p477_p4 = scmp.lt.s32.totalorder %s16_s10, %s16_s10 }
   0xa   :  { %p473_p3 = scmp.ne.s32.totalorder %s16_s10, %s472_s18  ;;  %p478_p5 = scmp.lt.s32.totalorder %s472_s18, %s472_s18 }
   0xc   :  { %p479_p6 = por %p478_p5, %p477_p4 }
   0xe   :  { %p480_p7 = pnand %p479_p6, %p473_p3 }
  0x10   :  { %483 = shalt.err (!%p480_p7)
}
  0x11   :  { %s535_s19 = smov 128   ;;  %s536_s20 = smov 8  }
  0x12   :  { %21 = dma.hbm_to_vmem [thread:$0]  %s673_s0, 256, %s16_s10, [#allocation3], %s535_s19, %s535_s19, %s536_s20  }
  0x13   :  { %s537_s23 = smov [#allocation5]   ;;  %s484_s27 = scalar_lea.hbm %s674_s1, 256 }
  0x14   :  { %s27_s24 = sshll.u32 %s537_s23, 4  ;;  %p485_p8 = scmp.ne.s32.totalorder %s674_s1, %s484_s27  ;;  %s28_s24 = int_to_ptr.vmem [resolvable:$true] %s27_s24 }
  0x15   :  { %p488_p9 = scmp.lt.u32.totalorder %s484_s27, %s674_s1 }
  0x17   :  { %p490_p10 = pnand %p488_p9, %p485_p8 }
  0x19   :  { %493 = shalt.err (!%p490_p10)
}
  0x1a   :  { %s494_s4 = scalar_lea.vmem %s28_s24, 256  ;;  %p499_p12 = scmp.lt.s32.totalorder %s28_s24, %s28_s24 }
  0x1b   :  { %p495_p11 = scmp.ne.s32.totalorder %s28_s24, %s494_s4  ;;  %p500_p13 = scmp.lt.s32.totalorder %s494_s4, %s494_s4 }
  0x1d   :  { %p501_p0 = por %p500_p13, %p499_p12 }
  0x1f   :  { %p502_p1 = pnand %p501_p0, %p495_p11 }
  0x21   :  { %505 = shalt.err (!%p502_p1)
}
  0x22   :  { %33 = dma.hbm_to_vmem [thread:$0]  %s674_s1, 256, %s28_s24, [#allocation6], %s535_s19, %s535_s19, %s536_s20  }
  0x23   :  { %528 = dma.done.wait [#allocation3], 256  }
  0x24   :  { %529 = vsyncadd [#allocation3], 4294967040 }
  0x25   :  { %530 = dma.done.wait [#allocation6], 256  }
  0x26   :  { %531 = vsyncadd [#allocation6], 4294967040  ;;  %v578_v0 = vld [vmem:[#allocation5] sm:$0xff]  ;;  %v580_v1 = vld [vmem:[#allocation2] sm:$0xff]  ;;  %v79_v14 = vlaneseq  ;;  %vm108_vm0 = vcmask 1041409   ;;  %vm112_vm2 = vcmask 58368  }
  0x27   :  { %v582_v2 = vld [vmem:[#allocation5 + $0x8] sm:$0xff]  ;;  %v67_v3 = vmul.f32 %v578_v0, %v578_v0  ;;  %v55_v4 = vmul.f32 %v580_v1, %v580_v1  ;;  %v588_v5 = vld [vmem:[#allocation2 + $0x8] sm:$0xff]  ;;  %s538_s19 = smov [#allocation7]  }
  0x28   :  { %v68_v6 = vmul.f32 %v582_v2, %v582_v2  ;;  %v56_v7 = vmul.f32 %v588_v5, %v588_v5  ;;  %v595_v17 = vshrl.u32 %v79_v14, 7  ;;  %s423_s20 = sshll.u32 %s538_s19, 4  ;;  %s424_s20 = int_to_ptr.vmem [resolvable:$true] %s423_s20 }
  0x29   :  { %69 = vadd.xlane.f32.xlu0 %v67_v3  ;;  %57 = vadd.xlane.f32.xlu1 %v55_v4  ;;  %s506_s22 = scalar_lea.vmem %s424_s20, 32  ;;  %p511_p3 = scmp.lt.s32.totalorder %s424_s20, %s424_s20 }
  0x2a   :  { %v83_v18 = vsub.s32 0, %v595_v17  ;;  %v126_v22 = vsub.s32 1, %v595_v17  ;;  %v167_v30 = vsub.s32 2, %v595_v17  ;;  %v208_v33 = vsub.s32 3, %v595_v17  ;;  %p507_p2 = scmp.ne.s32.totalorder %s424_s20, %s506_s22  ;;  %p512_p4 = scmp.lt.s32.totalorder %s506_s22, %s506_s22 }
  0x2b   :  { %v249_v38 = vsub.s32 4, %v595_v17  ;;  %v290_v43 = vsub.s32 5, %v595_v17  ;;  %v331_v48 = vsub.s32 6, %v595_v17  ;;  %v372_v53 = vsub.s32 7, %v595_v17 }
  0x2c   :  { %vm413_vm10 = vcmp.eq.s32.totalorder %v595_v17, 0  ;;  %p513_p5 = por %p512_p4, %p511_p3 }
  0x2d   :  { %71 = vadd.xlane.f32.xlu0 %v68_v6  ;;  %59 = vadd.xlane.f32.xlu1 %v56_v7  ;;  %v610_v6 = vand.u32 127, %v79_v14 }
  0x2e   :  { %p514_p6 = pnand %p513_p5, %p507_p2 }
  0x2f   :  { %vm95_vm1 = vcmp.ne.s32.totalorder %v610_v6, 0  ;;  %vm138_vm3 = vcmp.ne.s32.totalorder %v610_v6, 1  ;;  %vm179_vm4 = vcmp.ne.s32.totalorder %v610_v6, 2  ;;  %vm220_vm5 = vcmp.ne.s32.totalorder %v610_v6, 3 }
  0x30   :  { %vm261_vm6 = vcmp.ne.s32.totalorder %v610_v6, 4  ;;  %vm302_vm7 = vcmp.ne.s32.totalorder %v610_v6, 5  ;;  %vm343_vm8 = vcmp.ne.s32.totalorder %v610_v6, 6  ;;  %vm384_vm9 = vcmp.ne.s32.totalorder %v610_v6, 7 }
  0xb6   :  { %v70_v8 = vpop.xlane.xlu0 %69  ;;  %v58_v9 = vpop.xlane.xlu1 %57 }
  0xb7   :  { %v73_v10 = vmax.f32 %v70_v8, 1e-24  ;;  %v61_v11 = vmax.f32 %v58_v9, 1e-24  ;;  %v614_v8 = vsub.s32 %v610_v6, %v595_v17 }
  0xb9   :  { %454 = vrsqrt.f32 %v73_v10 }
  0xba   :  { %456 = vrsqrt.f32 %v61_v11  ;;  %v72_v12 = vpop.xlane.xlu0 %71  ;;  %v60_v13 = vpop.xlane.xlu1 %59 }
  0xbb   :  { %v74_v15 = vmax.f32 %v72_v12, 1e-24  ;;  %v62_v16 = vmax.f32 %v60_v13, 1e-24 }
  0xbd   :  { %458 = vrsqrt.f32 %v74_v15 }
  0xbe   :  { %460 = vrsqrt.f32 %v62_v16 }
  0xc3   :  { %v455_v19 = vpop.eup %454 }
  0xc4   :  { %v457_v20 = vpop.eup %456  ;;  %v77_v21 = vmul.f32 %v455_v19, %v578_v0 }
  0xc5   :  { %v65_v23 = vmul.f32 %v457_v20, %v580_v1 }
  0xc6   :  { %v84_v24 = vrot.slane %v77_v21, %v83_v18  ;;  %v127_v29 = vrot.slane %v77_v21, %v126_v22  ;;  %v168_v36 = vrot.slane %v77_v21, %v167_v30  ;;  %v209_v41 = vrot.slane %v77_v21, %v208_v33 }
  0xc7   :  { %v459_v25 = vpop.eup %458  ;;  %v250_v46 = vrot.slane %v77_v21, %v249_v38  ;;  %v291_v51 = vrot.slane %v77_v21, %v290_v43  ;;  %v332_v56 = vrot.slane %v77_v21, %v331_v48  ;;  %v373_v60 = vrot.slane %v77_v21, %v372_v53 }
  0xc8   :  { %v461_v26 = vpop.eup %460  ;;  %v78_v27 = vmul.f32 %v459_v25, %v582_v2  ;;  %v89_v28 = vmul.f32 %v84_v24, %v65_v23  ;;  %v132_v34 = vmul.f32 %v127_v29, %v65_v23  ;;  %v173_v39 = vmul.f32 %v168_v36, %v65_v23 }
  0xc9   :  { %v66_v31 = vmul.f32 %v461_v26, %v588_v5  ;;  %v214_v44 = vmul.f32 %v209_v41, %v65_v23  ;;  %v255_v49 = vmul.f32 %v250_v46, %v65_v23  ;;  %v296_v54 = vmul.f32 %v291_v51, %v65_v23 }
  0xca   :  { %91 = vadd.xlane.f32.xlu0 %v89_v28  ;;  %v88_v32 = vrot.slane %v78_v27, %v83_v18  ;;  %v131_v37 = vrot.slane %v78_v27, %v126_v22  ;;  %v172_v42 = vrot.slane %v78_v27, %v167_v30  ;;  %v213_v47 = vrot.slane %v78_v27, %v208_v33 }
  0xcb   :  { %v254_v52 = vrot.slane %v78_v27, %v249_v38  ;;  %v295_v57 = vrot.slane %v78_v27, %v290_v43  ;;  %v337_v58 = vmul.f32 %v332_v56, %v65_v23  ;;  %v336_v61 = vrot.slane %v78_v27, %v331_v48 }
  0xcc   :  { %v90_v35 = vmul.f32 %v88_v32, %v66_v31  ;;  %v133_v40 = vmul.f32 %v131_v37, %v66_v31  ;;  %v174_v45 = vmul.f32 %v172_v42, %v66_v31  ;;  %v215_v50 = vmul.f32 %v213_v47, %v66_v31 }
  0xcd   :  { %v256_v55 = vmul.f32 %v254_v52, %v66_v31  ;;  %v297_v59 = vmul.f32 %v295_v57, %v66_v31  ;;  %v378_v62 = vmul.f32 %v373_v60, %v65_v23  ;;  %v338_v63 = vmul.f32 %v336_v61, %v66_v31 }
  0xce   :  { %134 = vadd.xlane.f32.xlu0 %v132_v34  ;;  %93 = vadd.xlane.f32.xlu1 %v90_v35  ;;  %v377_v3 = vrot.slane %v78_v27, %v372_v53 }
  0xd0   :  { %v379_v4 = vmul.f32 %v377_v3, %v66_v31 }
  0xd2   :  { %175 = vadd.xlane.f32.xlu0 %v173_v39  ;;  %136 = vadd.xlane.f32.xlu1 %v133_v40 }
  0xd6   :  { %216 = vadd.xlane.f32.xlu0 %v214_v44  ;;  %177 = vadd.xlane.f32.xlu1 %v174_v45 }
  0xda   :  { %257 = vadd.xlane.f32.xlu0 %v255_v49  ;;  %218 = vadd.xlane.f32.xlu1 %v215_v50 }
  0xde   :  { %298 = vadd.xlane.f32.xlu0 %v296_v54  ;;  %259 = vadd.xlane.f32.xlu1 %v256_v55 }
  0xe2   :  { %339 = vadd.xlane.f32.xlu0 %v337_v58  ;;  %300 = vadd.xlane.f32.xlu1 %v297_v59 }
  0xe6   :  { %380 = vadd.xlane.f32.xlu0 %v378_v62  ;;  %341 = vadd.xlane.f32.xlu1 %v338_v63 }
  0xea   :  { %382 = vadd.xlane.f32.xlu1 %v379_v4 }
 0x157   :  { %v92_v7 = vpop.xlane.xlu0 %91 }
 0x158   :  { %v96_v9 = vand.u32 2147483647, %v92_v7 }
 0x15a   :  { %v103_v13 = vrot.slane %v96_v9, %v614_v8 }
 0x15b   :  { %v135_v10 = vpop.xlane.xlu0 %134  ;;  %v94_v11 = vpop.xlane.xlu1 %93 }
 0x15c   :  { %v97_v12 = vand.u32 2147483647, %v94_v11  ;;  %v139_v15 = vand.u32 2147483647, %v135_v10 }
 0x15e   :  { %v107_v16 = vrot.slane %v97_v12, %v614_v8  ;;  %v146_v22 = vrot.slane %v139_v15, %v614_v8 }
 0x15f   :  { %v176_v18 = vpop.xlane.xlu0 %175  ;;  %v137_v14 = vpop.xlane.xlu1 %136 }
 0x160   :  { %v140_v19 = vand.u32 2147483647, %v137_v14  ;;  %v109_v20 = vsel %vm108_vm0, %v107_v16, %v103_v13  ;;  %v180_v23 = vand.u32 2147483647, %v176_v18 }
 0x161   :  { %v111_v21 = vsel %vm95_vm1, %v109_v20, 0.0 }
 0x162   :  { %v150_v24 = vrot.slane %v140_v19, %v614_v8  ;;  %v113_v25 = vsel %vm112_vm2, %v111_v21, 0.0  ;;  %v187_v31 = vrot.slane %v180_v23, %v614_v8 }
 0x163   :  { %v217_v26 = vpop.xlane.xlu0 %216  ;;  %114 = vadd.xlane.f32.xlu0 %v113_v25  ;;  %v178_v27 = vpop.xlane.xlu1 %177 }
 0x164   :  { %v181_v28 = vand.u32 2147483647, %v178_v27  ;;  %v151_v29 = vsel %vm108_vm0, %v150_v24, %v146_v22  ;;  %v221_v32 = vand.u32 2147483647, %v217_v26 }
 0x165   :  { %v153_v30 = vsel %vm138_vm3, %v151_v29, 0.0 }
 0x166   :  { %v191_v33 = vrot.slane %v181_v28, %v614_v8  ;;  %v154_v34 = vsel %vm112_vm2, %v153_v30, 0.0  ;;  %v228_v40 = vrot.slane %v221_v32, %v614_v8 }
 0x167   :  { %v258_v35 = vpop.xlane.xlu0 %257  ;;  %155 = vadd.xlane.f32.xlu1 %v154_v34  ;;  %v219_v36 = vpop.xlane.xlu1 %218 }
 0x168   :  { %v222_v37 = vand.u32 2147483647, %v219_v36  ;;  %v192_v38 = vsel %vm108_vm0, %v191_v33, %v187_v31  ;;  %v262_v41 = vand.u32 2147483647, %v258_v35 }
 0x169   :  { %v194_v39 = vsel %vm179_vm4, %v192_v38, 0.0 }
 0x16a   :  { %v232_v42 = vrot.slane %v222_v37, %v614_v8  ;;  %v195_v43 = vsel %vm112_vm2, %v194_v39, 0.0  ;;  %v269_v49 = vrot.slane %v262_v41, %v614_v8 }
 0x16b   :  { %v299_v44 = vpop.xlane.xlu0 %298  ;;  %196 = vadd.xlane.f32.xlu0 %v195_v43  ;;  %v260_v45 = vpop.xlane.xlu1 %259 }
 0x16c   :  { %v263_v46 = vand.u32 2147483647, %v260_v45  ;;  %v233_v47 = vsel %vm108_vm0, %v232_v42, %v228_v40  ;;  %v303_v50 = vand.u32 2147483647, %v299_v44 }
 0x16d   :  { %v235_v48 = vsel %vm220_vm5, %v233_v47, 0.0 }
 0x16e   :  { %v273_v51 = vrot.slane %v263_v46, %v614_v8  ;;  %v236_v52 = vsel %vm112_vm2, %v235_v48, 0.0  ;;  %v310_v58 = vrot.slane %v303_v50, %v614_v8 }
 0x16f   :  { %v340_v53 = vpop.xlane.xlu0 %339  ;;  %237 = vadd.xlane.f32.xlu1 %v236_v52  ;;  %v301_v54 = vpop.xlane.xlu1 %300 }
 0x170   :  { %v304_v55 = vand.u32 2147483647, %v301_v54  ;;  %v274_v56 = vsel %vm108_vm0, %v273_v51, %v269_v49  ;;  %v344_v59 = vand.u32 2147483647, %v340_v53 }
 0x171   :  { %v276_v57 = vsel %vm261_vm6, %v274_v56, 0.0 }
 0x172   :  { %v314_v60 = vrot.slane %v304_v55, %v614_v8  ;;  %v277_v61 = vsel %vm112_vm2, %v276_v57, 0.0  ;;  %v351_v9 = vrot.slane %v344_v59, %v614_v8 }
 0x173   :  { %v381_v62 = vpop.xlane.xlu0 %380  ;;  %278 = vadd.xlane.f32.xlu0 %v277_v61  ;;  %v342_v63 = vpop.xlane.xlu1 %341 }
 0x174   :  { %v345_v3 = vand.u32 2147483647, %v342_v63  ;;  %v315_v4 = vsel %vm108_vm0, %v314_v60, %v310_v58  ;;  %v385_v10 = vand.u32 2147483647, %v381_v62 }
 0x175   :  { %v317_v7 = vsel %vm302_vm7, %v315_v4, 0.0 }
 0x176   :  { %v355_v11 = vrot.slane %v345_v3, %v614_v8  ;;  %v318_v12 = vsel %vm112_vm2, %v317_v7, 0.0  ;;  %v392_v14 = vrot.slane %v385_v10, %v614_v8 }
 0x177   :  { %319 = vadd.xlane.f32.xlu1 %v318_v12  ;;  %v383_v13 = vpop.xlane.xlu1 %382 }
 0x178   :  { %v386_v15 = vand.u32 2147483647, %v383_v13  ;;  %v356_v16 = vsel %vm108_vm0, %v355_v11, %v351_v9 }
 0x179   :  { %v358_v18 = vsel %vm343_vm8, %v356_v16, 0.0 }
 0x17a   :  { %v396_v19 = vrot.slane %v386_v15, %v614_v8  ;;  %v359_v20 = vsel %vm112_vm2, %v358_v18, 0.0 }
 0x17b   :  { %360 = vadd.xlane.f32.xlu0 %v359_v20 }
 0x17c   :  { %v397_v21 = vsel %vm108_vm0, %v396_v19, %v392_v14 }
 0x17d   :  { %v399_v22 = vsel %vm384_vm9, %v397_v21, 0.0  ;;  %v44_v21 = vsub.f32 %v580_v1, %v578_v0 }
 0x17e   :  { %v400_v23 = vsel %vm112_vm2, %v399_v22, 0.0  ;;  %v45_v22 = vsub.f32 %v588_v5, %v582_v2 }
 0x17f   :  { %401 = vadd.xlane.f32.xlu1 %v400_v23  ;;  %v46_v23 = vmul.f32 %v44_v21, %v44_v21 }
 0x1f0   :  { %v115_v24 = vpop.xlane.xlu0 %114 }
 0x1f1   :  { %v116_v25 = vrot.slane %v115_v24, 4 }
 0x1f3   :  { %v117_v26 = vadd.f32 %v116_v25, %v115_v24  ;;  %v47_v24 = vmul.f32 %v45_v22, %v45_v22 }
 0x1f4   :  { %v156_v27 = vpop.xlane.xlu1 %155 }
 0x1f5   :  { %v118_v28 = vrot.slane %v117_v26, 2  ;;  %v157_v29 = vrot.slane %v156_v27, 4  ;;  %v48_v25 = vadd.f32 %v47_v24, %v46_v23 }
 0x1f7   :  { %v158_v30 = vadd.f32 %v157_v29, %v156_v27  ;;  %v119_v31 = vadd.f32 %v118_v28, %v117_v26  ;;  %v49_v26 = vrot.slane %v48_v25, 4 }
 0x1f8   :  { %v197_v8 = vpop.xlane.xlu0 %196 }
 0x1f9   :  { %v159_v32 = vrot.slane %v158_v30, 2  ;;  %v198_v33 = vrot.slane %v197_v8, 4  ;;  %v120_v34 = vrot.slane %v119_v31, 1  ;;  %v50_v27 = vadd.f32 %v49_v26, %v48_v25 }
 0x1fb   :  { %v199_v6 = vadd.f32 %v198_v33, %v197_v8  ;;  %v121_v35 = vadd.f32 %v120_v34, %v119_v31  ;;  %v160_v36 = vadd.f32 %v159_v32, %v158_v30  ;;  %v51_v28 = vrot.slane %v50_v27, 2 }
 0x1fc   :  { %v238_v37 = vpop.xlane.xlu1 %237 }
 0x1fd   :  { %v200_v38 = vrot.slane %v199_v6, 2  ;;  %v239_v39 = vrot.slane %v238_v37, 4  ;;  %433 = vpush %v121_v35  ;;  %v161_v40 = vrot.slane %v160_v36, 1  ;;  %v52_v29 = vadd.f32 %v51_v28, %v50_v27 }
 0x1ff   :  { %v240_v41 = vadd.f32 %v239_v39, %v238_v37  ;;  %v162_v42 = vadd.f32 %v161_v40, %v160_v36  ;;  %v201_v43 = vadd.f32 %v200_v38, %v199_v6  ;;  %v53_v0 = vrot.slane %v52_v29, 1 }
 0x200   :  { %v279_v44 = vpop.xlane.xlu0 %278 }
 0x201   :  { %v241_v45 = vrot.slane %v240_v41, 2  ;;  %v280_v46 = vrot.slane %v279_v44, 4  ;;  %435 = vpush %v162_v42  ;;  %v202_v47 = vrot.slane %v201_v43, 1  ;;  %v54_v1 = vadd.f32 %v53_v0, %v52_v29 }
 0x203   :  { %v281_v48 = vadd.f32 %v280_v46, %v279_v44  ;;  %v203_v49 = vadd.f32 %v202_v47, %v201_v43  ;;  %v242_v50 = vadd.f32 %v241_v45, %v240_v41 }
 0x204   :  { %v320_v51 = vpop.xlane.xlu1 %319 }
 0x205   :  { %v282_v52 = vrot.slane %v281_v48, 2  ;;  %v321_v53 = vrot.slane %v320_v51, 4  ;;  %437 = vpush %v203_v49  ;;  %v243_v54 = vrot.slane %v242_v50, 1 }
 0x207   :  { %v322_v55 = vadd.f32 %v321_v53, %v320_v51  ;;  %v244_v56 = vadd.f32 %v243_v54, %v242_v50  ;;  %v283_v57 = vadd.f32 %v282_v52, %v281_v48 }
 0x208   :  { %v361_v58 = vpop.xlane.xlu0 %360 }
 0x209   :  { %v323_v59 = vrot.slane %v322_v55, 2  ;;  %v362_v60 = vrot.slane %v361_v58, 4  ;;  %439 = vpush %v244_v56  ;;  %v284_v61 = vrot.slane %v283_v57, 1 }
 0x20b   :  { %v363_v62 = vadd.f32 %v362_v60, %v361_v58  ;;  %v285_v63 = vadd.f32 %v284_v61, %v283_v57  ;;  %v324_v3 = vadd.f32 %v323_v59, %v322_v55 }
 0x20c   :  { %v402_v4 = vpop.xlane.xlu1 %401 }
 0x20d   :  { %v364_v7 = vrot.slane %v363_v62, 2  ;;  %v403_v9 = vrot.slane %v402_v4, 4  ;;  %441 = vpush %v285_v63  ;;  %v325_v10 = vrot.slane %v324_v3, 1 }
 0x20f   :  { %v365_v11 = vadd.f32 %v364_v7, %v363_v62  ;;  %v404_v12 = vadd.f32 %v403_v9, %v402_v4  ;;  %v326_v13 = vadd.f32 %v325_v10, %v324_v3 }
 0x211   :  { %v405_v15 = vrot.slane %v404_v12, 2  ;;  %443 = vpush %v326_v13  ;;  %v366_v16 = vrot.slane %v365_v11, 1 }
 0x213   :  { %v406_v18 = vadd.f32 %v405_v15, %v404_v12  ;;  %v367_v14 = vadd.f32 %v366_v16, %v365_v11 }
 0x215   :  { %445 = vpush %v367_v14  ;;  %v407_v19 = vrot.slane %v406_v18, 1 }
 0x217   :  { %v408_v20 = vadd.f32 %v407_v19, %v406_v18 }
 0x219   :  { %447 = vpush %v408_v20 }
 0x22e   :  { %s434_s1 = spop %433 }
 0x232   :  { %s436_s6 = spop %435 }
 0x233   :  { %s164_s8 = sadd.f32 %s436_s6, %s434_s1 }
 0x236   :  { %s438_s7 = spop %437 }
 0x237   :  { %s205_s10 = sadd.f32 %s438_s7, %s164_s8 }
 0x23a   :  { %s440_s9 = spop %439 }
 0x23b   :  { %s246_s12 = sadd.f32 %s440_s9, %s205_s10 }
 0x23e   :  { %s442_s11 = spop %441 }
 0x23f   :  { %s287_s14 = sadd.f32 %s442_s11, %s246_s12 }
 0x242   :  { %s444_s13 = spop %443 }
 0x243   :  { %s328_s16 = sadd.f32 %s444_s13, %s287_s14 }
 0x246   :  { %s446_s15 = spop %445 }
 0x247   :  { %s369_s17 = sadd.f32 %s446_s15, %s328_s16 }
 0x24a   :  { %s448_s18 = spop %447 }
 0x24b   :  { %s410_s21 = sadd.f32 %s448_s18, %s369_s17 }
 0x24d   :  { %v414_v2 = vstv %s410_s21 }
 0x24e   :  { %v415_v5 = vsel %vm413_vm10, %v54_v1, %v414_v2 }
 0x24f   :  { %416 = vst [vmem:[#allocation7] sm:$0x3] %v415_v5 }
 0x250   :  { %517 = shalt.err (!%p514_p6)
}
 0x251   :  { %s518_s25 = scalar_lea.hbm %s675_s2, 32 }
 0x252   :  { %p519_p7 = scmp.ne.s32.totalorder %s675_s2, %s518_s25  ;;  %p522_p8 = scmp.lt.u32.totalorder %s518_s25, %s675_s2 }
 0x254   :  { %p524_p9 = pnand %p522_p8, %p519_p7 }
 0x256   :  { %527 = shalt.err (!%p524_p9)
}
 0x257   :  { %426 = dma.vmem_to_hbm [thread:$0]  %s424_s20, 32, %s675_s2, [#allocation4]  }
 0x258   :  { %532 = dma.done.wait [#allocation4], 32  }
 0x259   :  { %533 = vsyncadd [#allocation4], 4294967264 }
 0x25a   :  { %430 = vsyncpa [#allocation3], 1 }
 0x25b   :  { %431 = vsyncpa [#allocation6], 1 }
 0x25c   :  { %432 = vsyncpa [#allocation4], 1 }

</bundles_post_ra>
